<compile_context>
chip_gen: v6e
topology: v6e:2x2x1
jax: 0.10.0
libtpu: 0.0.40
codegen_flags: <defaults>
</compile_context>

<pallas_src>
import functools
import math

import jax
import jax.numpy as jnp
from jax.experimental import pallas as pl
from jax.experimental.pallas import tpu as pltpu


def _round_up(n, m):
    return ((n + m - 1) // m) * m


def _relu(h):
    # Default `actvton`.  Any element-wise jnp callable (e.g. jnp.tanh) works.
    return jnp.maximum(h, 0.0)


def _mlp_kernel(num_layers, activation, mxu_dtype, x_ref, *refs):
    """Fused MLP forward: refs = (w0, b0, w1, b1, ..., w_{L-1}, b_{L-1}, out_ref)."""
    param_refs = refs[: 2 * num_layers]
    o_ref = refs[2 * num_layers]

    # Cast to the MXU input dtype only at the matmul boundary; bias add and
    # activation stay in f32 (accumulation via preferred_element_type).
    h = x_ref[...]
    for k in range(num_layers):
        w_ref = param_refs[2 * k]
        b_ref = param_refs[2 * k + 1]
        a = h if h.dtype == mxu_dtype else h.astype(mxu_dtype)
        h = jnp.dot(a, w_ref[...], preferred_element_type=jnp.float32)
        h = h + b_ref[...].astype(jnp.float32)
        if k < num_layers - 1:
            h = activation(h)
    o_ref[...] = h.astype(o_ref.dtype)


def _choose_batch_tile(B, in_dim, out_dim, widths, params_bytes, target=1024):
    """Batch tile: multiple of 8, as large as a ~12 MiB VMEM budget allows,
    while keeping >= 2 grid steps for realistic batches (v7x megacore)."""
    b8 = _round_up(max(B, 1), 8)
    max_width = max([in_dim] + list(widths))
    # Double-buffered x/out tiles + two live f32 intermediates per row.
    per_row_bytes = 4 * (2 * in_dim + 2 * out_dim + 2 * max_width)
    budget = 12 * 1024 * 1024
    avail = max(per_row_bytes * 8, budget - 2 * params_bytes)
    vmem_cap = max(8, (avail // per_row_bytes) // 8 * 8)
    # Keep at least two grid steps when the batch is big enough to split.
    two_step_cap = _round_up(pl.cdiv(B, 2), 8) if B >= 16 else b8
    two_step_cap = max(8, two_step_cap)
    return int(min(target, b8, vmem_cap, two_step_cap))


def propensity_mlp_forward(
    x,
    weights,
    biases,
    *,
    activation=_relu,
    batch_tile=None,
    mxu_dtype=jnp.float32,
):
    """Fused forward pass of PropensityTorchMlpBase.

    x:       (B, input_dim) array
    weights: list of (in_k, out_k) f32 arrays  (transposed vs torch's (out, in))
    biases:  list of (out_k,)      f32 arrays
    mxu_dtype: float32 (exact module semantics, default) or bfloat16 (opt-in
               for v6e/v7x MXU throughput; small rounding at the MXU boundary).
    """
    num_layers = len(weights)
    assert num_layers >= 1 and len(biases) == num_layers

    B, in_dim = x.shape
    assert weights[0].shape[0] == in_dim
    out_dim = weights[-1].shape[1]

    # Weights feed the MXU: store them directly in the MXU dtype.  Biases stay
    # f32 as (1, out_k) rows so the in-kernel add broadcasts over sublanes.
    w_list = [jnp.asarray(w, jnp.float32).astype(mxu_dtype) for w in weights]
    biases2d = [jnp.asarray(b, jnp.float32).reshape(1, -1) for b in biases]

    widths = [w.shape[1] for w in w_list]
    params_bytes = sum(
        int(w.size) * jnp.dtype(mxu_dtype).itemsize for w in w_list
    ) + sum(int(b.size) * 4 for b in biases2d)

    if batch_tile is None:
        batch_tile = _choose_batch_tile(B, in_dim, out_dim, widths, params_bytes)
    batch_tile = max(8, (int(batch_tile) // 8) * 8)
    batch_tile = min(batch_tile, _round_up(B, 8))

    # Ragged last block handled by Pallas (no wrapper-side batch padding).
    grid = (pl.cdiv(B, batch_tile),)

    x_f32 = jnp.asarray(x, jnp.float32)

    flat_params = []
    for w, b2 in zip(w_list, biases2d):
        flat_params.extend([w, b2])

    # Advisory scheduling hint for XLA around this small custom call.
    flops = 2 * B * sum(w.shape[0] * w.shape[1] for w in w_list)
    bytes_accessed = int(x_f32.size) * 4 + B * out_dim * 4 + params_bytes
    cost = pl.CostEstimate(
        flops=int(flops), transcendentals=0, bytes_accessed=int(bytes_accessed)
    )

    # Explicit scoped-VMEM limit: enough for double-buffered tiles + params,
    # clamped to [32 MiB, 48 MiB] (safe on v5e/v6e/v7x physical VMEM).
    max_width = max([in_dim] + list(widths))
    vmem_need = (
        2 * batch_tile * (in_dim + out_dim) * 4
        + 2 * params_bytes
        + 2 * batch_tile * max_width * 4
    )
    vmem_limit = int(min(48 * 1024 * 1024, max(2 * vmem_need, 32 * 1024 * 1024)))

    kernel = functools.partial(_mlp_kernel, num_layers, activation, mxu_dtype)

    x_spec = pl.BlockSpec((batch_tile, in_dim), lambda i: (i, 0))
    out_spec = pl.BlockSpec((batch_tile, out_dim), lambda i: (i, 0))
    param_specs = []
    for w, b2 in zip(w_list, biases2d):
        # Full-array blocks, constant index maps (parameters are tiny).
        param_specs.append(pl.BlockSpec(w.shape, lambda i: (0, 0)))
        param_specs.append(pl.BlockSpec(b2.shape, lambda i: (0, 0)))

    out = pl.pallas_call(
        kernel,
        out_shape=jax.ShapeDtypeStruct((B, out_dim), jnp.float32),
        grid=grid,
        in_specs=[x_spec] + param_specs,
        out_specs=out_spec,
        compiler_params=pltpu.CompilerParams(
            dimension_semantics=("parallel",),
            vmem_limit_bytes=vmem_limit,
        ),
        cost_estimate=cost,
    )(x_f32, *flat_params)

    return out


# ---------------- parameter construction / pure-JAX reference ----------------


def xavier_uniform(key, fan_in, fan_out, dtype=jnp.float32):
    """torch.nn.init.xavier_uniform_ equivalent (gain=1), stored as (in, out)."""
    bound = math.sqrt(6.0 / (fan_in + fan_out))
    return jax.random.uniform(
        key, (fan_in, fan_out), dtype=dtype, minval=-bound, maxval=bound
    )


def build_params(key, input_dim, layers_dim, init_bias=0.0):
    dims = [input_dim] + list(layers_dim)
    keys = jax.random.split(key, len(layers_dim))
    weights, biases = [], []
    for k, (d_in, d_out) in zip(keys, zip(dims[:-1], dims[1:])):
        weights.append(xavier_uniform(k, d_in, d_out))
        biases.append(jnp.full((d_out,), init_bias, dtype=jnp.float32))
    return weights, biases


def reference_forward(x, weights, biases, activation=_relu):
    h = x.astype(jnp.float32)
    for k, (w, b) in enumerate(zip(weights, biases)):
        h = jnp.dot(h, w, precision=jax.lax.Precision.HIGHEST) + b
        if k < len(weights) - 1:
            h = activation(h)
    return h


if __name__ == "__main__":
    key = jax.random.PRNGKey(0)
    k_x, k_p = jax.random.split(key)

    # Small shapes consistent with the module:
    #   input_dim=16, layers_dim=[32, 32, 4], actvton=ReLU, init_bias=0.1
    batch, input_dim = 50, 16
    layers_dim = [32, 32, 4]

    x = jax.random.normal(k_x, (batch, input_dim), dtype=jnp.float32)
    weights, biases = build_params(k_p, input_dim, layers_dim, init_bias=0.1)

    ref = reference_forward(x, weights, biases)

    # Default f32 MXU path (exact module semantics), automatic tile selection;
    # batch=50 is not a tile multiple, exercising the ragged last block.
    out_f32 = propensity_mlp_forward(x, weights, biases)
    out_f32 = jax.block_until_ready(out_f32)
    assert out_f32.shape == (batch, layers_dim[-1])
    assert jnp.allclose(out_f32, ref, atol=2e-2, rtol=2e-2), "f32-MXU mismatch"

    # Opt-in bf16 MXU path; small explicit batch_tile so the grid has several
    # steps plus a ragged tail block.
    out_bf16 = propensity_mlp_forward(
        x, weights, biases, mxu_dtype=jnp.bfloat16, batch_tile=16
    )
    out_bf16 = jax.block_until_ready(out_bf16)
    assert out_bf16.shape == (batch, layers_dim[-1])
    assert jnp.allclose(out_bf16, ref, atol=5e-2, rtol=5e-2), "bf16-MXU mismatch"

    print("KERNEL_OK")
</pallas_src>

<mosaic_0001>
module attributes {stable_mosaic.version = 11 : i64} {
  func.func @_mlp_kernel(%arg0: i32, %arg1: memref<32x16xf32, #tpu.memory_space<vmem>>, %arg2: memref<16x32xf32, #tpu.memory_space<vmem>>, %arg3: memref<1x32xf32, #tpu.memory_space<vmem>>, %arg4: memref<32x32xf32, #tpu.memory_space<vmem>>, %arg5: memref<1x32xf32, #tpu.memory_space<vmem>>, %arg6: memref<32x4xf32, #tpu.memory_space<vmem>>, %arg7: memref<1x4xf32, #tpu.memory_space<vmem>>, %arg8: memref<32x4xf32, #tpu.memory_space<vmem>>) attributes {dimension_semantics = [#tpu.dimension_semantics<parallel>], iteration_bounds = array<i64: 2>, scalar_prefetch = 0 : i64, scratch_operands = 0 : i64, tpu.core_type = #tpu.core_type<tc>, window_params = [{transform_indices = @transform_0, window_bounds = array<i64: 32, 16>}, {pipeline_mode = #tpu.pipeline_mode<synchronous>, transform_indices = @transform_1, window_bounds = array<i64: 16, 32>}, {pipeline_mode = #tpu.pipeline_mode<synchronous>, transform_indices = @transform_2, window_bounds = array<i64: 1, 32>}, {pipeline_mode = #tpu.pipeline_mode<synchronous>, transform_indices = @transform_3, window_bounds = array<i64: 32, 32>}, {pipeline_mode = #tpu.pipeline_mode<synchronous>, transform_indices = @transform_4, window_bounds = array<i64: 1, 32>}, {pipeline_mode = #tpu.pipeline_mode<synchronous>, transform_indices = @transform_5, window_bounds = array<i64: 32, 4>}, {pipeline_mode = #tpu.pipeline_mode<synchronous>, transform_indices = @transform_6, window_bounds = array<i64: 1, 4>}, {transform_indices = @transform_7, window_bounds = array<i64: 32, 4>}]} {
    %c0 = arith.constant 0 : index
    %c0_0 = arith.constant 0 : index
    %0 = vector.load %arg1[%c0, %c0_0] : memref<32x16xf32, #tpu.memory_space<vmem>>, vector<32x16xf32>
    %c0_1 = arith.constant 0 : index
    %c0_2 = arith.constant 0 : index
    %1 = vector.load %arg2[%c0_1, %c0_2] : memref<16x32xf32, #tpu.memory_space<vmem>>, vector<16x32xf32>
    %cst = arith.constant dense<0.000000e+00> : vector<32x32xf32>
    %2 = tpu.matmul %0, %1, %cst {dimension_numbers = #tpu.dot_dimension_numbers<[1], [0], [0], [1], [0, 0, 1, 1], [], []>} : vector<32x16xf32>, vector<16x32xf32>, vector<32x32xf32> -> vector<32x32xf32>
    %c0_3 = arith.constant 0 : index
    %c0_4 = arith.constant 0 : index
    %3 = vector.load %arg3[%c0_3, %c0_4] : memref<1x32xf32, #tpu.memory_space<vmem>>, vector<1x32xf32>
    %4 = vector.broadcast %3 : vector<1x32xf32> to vector<32x32xf32>
    %5 = arith.addf %2, %4 : vector<32x32xf32>
    %cst_5 = arith.constant 0.000000e+00 : f32
    %6 = vector.broadcast %cst_5 : f32 to vector<32x32xf32>
    %7 = arith.maximumf %5, %6 : vector<32x32xf32>
    %c0_6 = arith.constant 0 : index
    %c0_7 = arith.constant 0 : index
    %8 = vector.load %arg4[%c0_6, %c0_7] : memref<32x32xf32, #tpu.memory_space<vmem>>, vector<32x32xf32>
    %cst_8 = arith.constant dense<0.000000e+00> : vector<32x32xf32>
    %9 = tpu.matmul %7, %8, %cst_8 {dimension_numbers = #tpu.dot_dimension_numbers<[1], [0], [0], [1], [0, 0, 1, 1], [], []>} : vector<32x32xf32>, vector<32x32xf32>, vector<32x32xf32> -> vector<32x32xf32>
    %c0_9 = arith.constant 0 : index
    %c0_10 = arith.constant 0 : index
    %10 = vector.load %arg5[%c0_9, %c0_10] : memref<1x32xf32, #tpu.memory_space<vmem>>, vector<1x32xf32>
    %11 = vector.broadcast %10 : vector<1x32xf32> to vector<32x32xf32>
    %12 = arith.addf %9, %11 : vector<32x32xf32>
    %cst_11 = arith.constant 0.000000e+00 : f32
    %13 = vector.broadcast %cst_11 : f32 to vector<32x32xf32>
    %14 = arith.maximumf %12, %13 : vector<32x32xf32>
    %c0_12 = arith.constant 0 : index
    %c0_13 = arith.constant 0 : index
    %15 = vector.load %arg6[%c0_12, %c0_13] : memref<32x4xf32, #tpu.memory_space<vmem>>, vector<32x4xf32>
    %cst_14 = arith.constant dense<0.000000e+00> : vector<32x4xf32>
    %16 = tpu.matmul %14, %15, %cst_14 {dimension_numbers = #tpu.dot_dimension_numbers<[1], [0], [0], [1], [0, 0, 1, 1], [], []>} : vector<32x32xf32>, vector<32x4xf32>, vector<32x4xf32> -> vector<32x4xf32>
    %c0_15 = arith.constant 0 : index
    %c0_16 = arith.constant 0 : index
    %17 = vector.load %arg7[%c0_15, %c0_16] : memref<1x4xf32, #tpu.memory_space<vmem>>, vector<1x4xf32>
    %18 = vector.broadcast %17 : vector<1x4xf32> to vector<32x4xf32>
    %19 = arith.addf %16, %18 : vector<32x4xf32>
    %c0_17 = arith.constant 0 : index
    %c0_18 = arith.constant 0 : index
    %20 = vector.load %arg8[%c0_17, %c0_18] : memref<32x4xf32, #tpu.memory_space<vmem>>, vector<32x4xf32>
    tpu.vector_store %arg8[%c0_17, %c0_18], %19 {strides = array<i32>} : memref<32x4xf32, #tpu.memory_space<vmem>>, vector<32x4xf32>,
    return
  }
  func.func @transform_0(%arg0: i32) -> (i32, i32) {
    %c0_i32 = arith.constant 0 : i32
    %c0_i32_0 = arith.constant 0 : i32
    return %arg0, %c0_i32 : i32, i32
  }
  func.func @transform_1(%arg0: i32) -> (i32, i32) {
    %c0_i32 = arith.constant 0 : i32
    %c0_i32_0 = arith.constant 0 : i32
    %c0_i32_1 = arith.constant 0 : i32
    return %c0_i32, %c0_i32_0 : i32, i32
  }
  func.func @transform_2(%arg0: i32) -> (i32, i32) {
    %c0_i32 = arith.constant 0 : i32
    %c0_i32_0 = arith.constant 0 : i32
    %c0_i32_1 = arith.constant 0 : i32
    return %c0_i32, %c0_i32_0 : i32, i32
  }
  func.func @transform_3(%arg0: i32) -> (i32, i32) {
    %c0_i32 = arith.constant 0 : i32
    %c0_i32_0 = arith.constant 0 : i32
    %c0_i32_1 = arith.constant 0 : i32
    return %c0_i32, %c0_i32_0 : i32, i32
  }
  func.func @transform_4(%arg0: i32) -> (i32, i32) {
    %c0_i32 = arith.constant 0 : i32
    %c0_i32_0 = arith.constant 0 : i32
    %c0_i32_1 = arith.constant 0 : i32
    return %c0_i32, %c0_i32_0 : i32, i32
  }
  func.func @transform_5(%arg0: i32) -> (i32, i32) {
    %c0_i32 = arith.constant 0 : i32
    %c0_i32_0 = arith.constant 0 : i32
    %c0_i32_1 = arith.constant 0 : i32
    return %c0_i32, %c0_i32_0 : i32, i32
  }
  func.func @transform_6(%arg0: i32) -> (i32, i32) {
    %c0_i32 = arith.constant 0 : i32
    %c0_i32_0 = arith.constant 0 : i32
    %c0_i32_1 = arith.constant 0 : i32
    return %c0_i32, %c0_i32_0 : i32, i32
  }
  func.func @transform_7(%arg0: i32) -> (i32, i32) {
    %c0_i32 = arith.constant 0 : i32
    %c0_i32_0 = arith.constant 0 : i32
    return %arg0, %c0_i32 : i32, i32
  }
}

</mosaic_0001>

<bundles_post_ra>
// kernel: tpu_custom_call.1
= control target key start
LH: loop header
LB: loop body
LE: loop exit
PB: predicated region body
PF: predicated region fallthrough
CT: control target
= control target key end

     0   :  { %s1187_s24 = smov 0   ;;  %s1189_s25 = smov 0   ;;  %s1334_s0 = inlined_call_operand.vmem [shape: f32[50,16], index: 0, kind: input, shape index: {}]   ;;  %s1335_s1 = inlined_call_operand.vmem [shape: f32[16,32], index: 1, kind: input, shape index: {}]   ;;  %s1336_s2 = inlined_call_operand.vmem [shape: f32[1,32], index: 2, kind: input, shape index: {}]   ;;  %s1337_s3 = inlined_call_operand.vmem [shape: f32[32,32], index: 3, kind: input, shape index: {}]   ;;  %s1338_s4 = inlined_call_operand.vmem [shape: f32[1,32], index: 4, kind: input, shape index: {}]   ;;  %s1339_s5 = inlined_call_operand.vmem [shape: f32[32,4], index: 5, kind: input, shape index: {}]   ;;  %s1340_s6 = inlined_call_operand.vmem [shape: f32[1,4], index: 6, kind: input, shape index: {}]   ;;  %s1341_s7 = inlined_call_operand.vmem [shape: f32[50,4], index: 7, kind: output, shape index: {}]  }
   0x1   :  { %s1191_s26 = smov 0  }
   0x2 LB: > { %s1200_s27 = sadd.s32 4294967295, %s1113_s26   ;;  %s1202_s28 = sadd.s32 1, %s1113_s26   ;;  %s1113_s26 = sphi %s1191_s26, %s1348_s26   ;;  %s1109_s25 = sphi %s1189_s25, %s1347_s25   ;;  %s1105_s24 = sphi %s1187_s24, %s1346_s24  }
   0x3   : > { %s173_s29 = ssub.s32 %s1113_s26, %s1202_s28  ;;  %s176_s30 = sadd.s32 1, %s1109_s25 }
   0x4   : > { %p174_p0 = scmp.eq.s32.totalorder %s173_s29, 0  ;;  %p186_p1 = scmp.ne.s32.totalorder %s1109_s25, %s1105_s24 }
   0x5   : > { %p187_p2 = scmp.eq.s32.totalorder %s1200_s27, 1  ;;  %p872_p3 = scmp.ge.s32.totalorder %s1113_s26, 1 }
   0x6   : > { %s1210_s8 = scalar_select %p174_p0, %s1109_s25, %s176_s30  }
   0x7   : > { %p1212_p4 = por %p187_p2, %p186_p1  ;;  %p246_p5 = scmp.lt.s32.totalorder %s1113_s26, 3 }
   0x9   : > { %p247_p6 = pnand %p872_p3, %p246_p5 }
   0xa   : > { %s1223_s14 = sshll.u32 (!%p247_p6), %s1200_s27, 2  ;;  %s278_s26 = sand.u32 (!%p247_p6), 1, %s1105_s24  }
   0xb   : > { %250 = sbr.rel (%p247_p6) target bundleno = 663 (0x297), region = 48  ;;  %p286_p7 = scmp.lt.s32.totalorder (!%p247_p6), %s1223_s14, 6 }
   0xc   : > { %s873_s29 = sshll.u32 (!%p247_p6), %s278_s26, 5 }
   0xd   : > { %s1272_s11 = scalar_lea.vmem (!%p247_p6), [#allocation2], %s873_s29  }
  0x10   : > { %v305_v0 = vld [vmem:[%s1335_s1 + $0x8] sm:$0xff]  ;;  %v304_v1 = vld [vmem:[%s1335_s1] sm:$0xff]  ;;  %s287_s15 = scalar_select %p286_p7, %s1223_s14, 6  ;;  %vm313_vm0 = vcmask 130048   ;;  %v418_v6 = vld [vmem:[%s1337_s3 + $0x18] sm:$0xff]  ;;  %vm426_vm1 = vcmask 261120  }
  0x11   : > { %933 = vmatprep.subr.mxu0 %v305_v0  ;;  %943 = vmatprep.subr.mxu1 %v418_v6  ;;  %v417_v7 = vld [vmem:[%s1337_s3 + $0x10] sm:$0xff]  ;;  %v416_v8 = vld [vmem:[%s1337_s3 + $0x8] sm:$0xff]  ;;  %v415_v9 = vld [vmem:[%s1337_s3] sm:$0xff]  ;;  %vm636_vm2 = vcmask 31744   ;;  %s649_s24 = ssub.s32 (%p1212_p4), 7, %s1223_s14  ;;  %s908_s12 = sshll.u32 (%p1212_p4), %s1200_s27, 5 }
  0x12   : > { %934 = vmatpush3.msra.mxu0 %v305_v0  ;;  %s875_s16 = sshll.u32 %s287_s15, 3  ;;  %944 = vmatpush3.msra.mxu1 %v418_v6  ;;  %v531_v10 = vld [vmem:[%s1339_s5 + $0x18] sm:$0xff]  ;;  %v876_v11 = vld [vmem:[%s1336_s2] ss:$0 sm:$0xff]  ;;  %v530_v24 = vld [vmem:[%s1339_s5 + $0x10] sm:$0xff]  ;;  %p650_p8 = scmp.lt.s32.totalorder (%p1212_p4), %s649_s24, 4 }
  0x13   : > { %935 = vmatprep.subr.mxu0 %v304_v1  ;;  %s289_s19 = scalar_lea.vmem %s1334_s0, %s875_s16  ;;  %945 = vmatprep.subr.mxu1 %v417_v7  ;;  %v529_v25 = vld [vmem:[%s1339_s5 + $0x8] sm:$0xff]  ;;  %v528_v26 = vld [vmem:[%s1339_s5] sm:$0xff]  ;;  %s1285_s16 = scalar_lea.vmem (%p1212_p4), %s1341_s7, %s908_s12  }
  0x14   : > { %936 = vmatpush3.msra.mxu0 %v304_v1  ;;  %v300_v2 = vld [vmem:[%s289_s19] sm:$0xff]  ;;  %v301_v3 = vld [vmem:[%s289_s19 + $0x8] sm:$0xff]  ;;  %v302_v4 = vld [vmem:[%s289_s19 + $0x10] sm:$0xff]  ;;  %946 = vmatpush3.msra.mxu1 %v417_v7 }
  0x15   : > { %937 = vmatprep.mubr.msk.f32.mxu0 %vm313_vm0, %v300_v2  ;;  %v303_v5 = vld [vmem:[%s289_s19 + $0x18] sm:$0xff]  ;;  %947 = vmatprep.subr.mxu1 %v416_v8  ;;  %v881_v27 = vld [vmem:[%s1338_s4] ss:$0 sm:$0xff] }
  0x16   : > { %938 = vmatmul.mubr.msk.f32.vlgmr.msra.gmra.mxu0 %vm313_vm0, %v301_v3  ;;  %948 = vmatpush3.msra.mxu1 %v416_v8  ;;  %v886_v40 = vld [vmem:[%s1340_s6] ss:$0 sm:$0xff] }
  0x17   : > { %940 = vmatprep.mubr.msk.f32.mxu0 %vm313_vm0, %v302_v4  ;;  %949 = vmatprep.subr.mxu1 %v415_v9 }
  0x18   : > { %950 = vmatpush3.msra.mxu1 %v415_v9  ;;  %957 = vmatprep.subr.mxu0 %v531_v10 }
  0x19   : > { %958 = vmatpush3.msra.mxu0 %v531_v10 }
  0x1a   : > { %941 = vmatmul.mubr.msk.f32.gmra.mxu0 %vm313_vm0, %v303_v5  ;;  %959 = vmatprep.subr.mxu0 %v530_v24 }
  0x1b   : > { %960 = vmatpush3.msra.mxu0 %v530_v24 }
  0x1c   : > { %961 = vmatprep.subr.mxu0 %v529_v25 }
  0x1d   : > { %962 = vmatpush3.msra.mxu0 %v529_v25 }
  0x1e   : > { %963 = vmatprep.subr.mxu0 %v528_v26 }
  0x1f   : > { %964 = vmatpush3.msra.mxu0 %v528_v26 }
  0xd6   : > { %v939_v12 = vpop.f32.mrf.mxu0 }
  0xd7   : > { %v398_v13 = vadd.f32 %v939_v12, %v876_v11 }
  0xd8   : > { %v392_v14 = vpop.f32.mrf.mxu0 }
  0xd9   : > { %v393_v15 = vadd.f32 %v876_v11, %v392_v14  ;;  %v412_v18 = vmax.f32 %v398_v13, 0.0 }
  0xda   : > { %v942_v16 = vpop.f32.mrf.mxu0 }
  0xdb   : > { %v411_v17 = vmax.f32 %v393_v15, 0.0  ;;  %v408_v19 = vadd.f32 %v942_v16, %v876_v11 }
  0xdc   : > { %v402_v20 = vpop.f32.mrf.mxu0 }
  0xdd   : > { %v403_v21 = vadd.f32 %v876_v11, %v402_v20  ;;  %951 = vmatprep.mubr.msk.f32.mxu1 %vm426_vm1, %v411_v17  ;;  %v414_v23 = vmax.f32 %v408_v19, 0.0 }
  0xde   : > { %952 = vmatmul.mubr.msk.f32.vlgmr.msra.gmra.mxu1 %vm426_vm1, %v412_v18 }
  0xdf   : > { %v413_v22 = vmax.f32 %v403_v21, 0.0 }
  0xe1   : > { %954 = vmatprep.mubr.msk.f32.mxu1 %vm426_vm1, %v413_v22 }
  0xe2   : > { %955 = vmatmul.mubr.msk.f32.gmra.mxu1 %vm426_vm1, %v414_v23 }
 0x19e   : > { %v953_v28 = vpop.f32.mrf.mxu1 }
 0x19f   : > { %v511_v29 = vadd.f32 %v953_v28, %v881_v27 }
 0x1a0   : > { %v505_v30 = vpop.f32.mrf.mxu1 }
 0x1a1   : > { %v506_v31 = vadd.f32 %v881_v27, %v505_v30  ;;  %v525_v34 = vmax.f32 %v511_v29, 0.0 }
 0x1a2   : > { %v956_v32 = vpop.f32.mrf.mxu1 }
 0x1a3   : > { %v524_v33 = vmax.f32 %v506_v31, 0.0  ;;  %v521_v35 = vadd.f32 %v956_v32, %v881_v27 }
 0x1a4   : > { %v515_v36 = vpop.f32.mrf.mxu1 }
 0x1a5   : > { %v516_v37 = vadd.f32 %v881_v27, %v515_v36  ;;  %965 = vmatprep.mubr.msk.f32.mxu0 %vm426_vm1, %v524_v33  ;;  %v527_v39 = vmax.f32 %v521_v35, 0.0 }
 0x1a6   : > { %966 = vmatmul.mubr.msk.f32.vlgmr.msra.gmra.mxu0 %vm426_vm1, %v525_v34 }
 0x1a7   : > { %v526_v38 = vmax.f32 %v516_v37, 0.0 }
 0x1a9   : > { %968 = vmatprep.mubr.msk.f32.mxu0 %vm426_vm1, %v526_v38 }
 0x1aa   : > { %969 = vmatmul.mubr.msk.f32.gmra.mxu0 %vm426_vm1, %v527_v39 }
 0x266   : > { %v967_v41 = vpop.f32.mrf.mxu0 }
 0x267   : > { %v623_v42 = vadd.f32 %v967_v41, %v886_v40 }
 0x268   : > { %v617_v43 = vpop.f32.mrf.mxu0 }
 0x269   : > { %638 = vst.msk [vmem:[%s1272_s11 + $0x8] sm:$0xff] %vm636_vm2, %v623_v42  ;;  %v618_v44 = vadd.f32 %v886_v40, %v617_v43 }
 0x26a   : > { %v970_v45 = vpop.f32.mrf.mxu0 }
 0x26b   : > { %637 = vst.msk [vmem:[%s1272_s11] sm:$0xff] %vm636_vm2, %v618_v44  ;;  %v633_v46 = vadd.f32 %v970_v45, %v886_v40  ;;  %647 = sbr.rel (!%p1212_p4) target bundleno = 663 (0x297), region = 52 }
 0x26c   : > { %v627_v47 = vpop.f32.mrf.mxu0 }
 0x26d   : > { %640 = vst.msk [vmem:[%s1272_s11 + $0x18] sm:$0xff] %vm636_vm2, %v633_v46  ;;  %v628_v48 = vadd.f32 %v886_v40, %v627_v47 }
 0x26f   : > { %639 = vst.msk [vmem:[%s1272_s11 + $0x10] sm:$0xff] %vm636_vm2, %v628_v48 }
 0x270   : > { %s1350_s24 = smov (!%p650_p8, %s649_s24), 4 }
 0x271   : > { %s893_s17 = sshll.u32 %s1350_s24, 7 }
 0x272   : > { %p896_p9 = scmp.eq.s32.totalorder %s893_s17, 0 }
 0x273   : > { %s1291_s18 = sshrl.u32 (!%p896_p9), %s1350_s24, 2 }
 0x274   : > { %658 = sbr.rel (%p896_p9) target bundleno = 663 (0x297), region = 56  ;;  %p897_p10 = scmp.le.s32.totalorder (!%p896_p9), %s1291_s18, 0 }
 0x279   : > { %825 = sbr.rel (%p897_p10) target bundleno = 646 (0x286), region = 132  ;;  %s1343_s27 = smov (!%p897_p10), %s1285_s16 }
 0x27a   : > { %s1344_s9 = smov (!%p897_p10), %s1272_s11  ;;  %s1300_s14 = smov (!%p897_p10), 0  }
 0x27b   : > { %s1127_s19 = smov (!%p897_p10), 0  }
 0x27e LB: >> { %v727_v49 = vld [vmem:[%s1121_s9] sm:$0xff]  ;;  %v729_v50 = vld [vmem:[%s1121_s9 + $0x8] sm:$0xff]  ;;  %v731_v51 = vld [vmem:[%s1121_s9 + $0x10] sm:$0xff]  ;;  %s735_s20 = sadd.s32 1, %s1125_s14  ;;  %s721_s19 = sadd.s32 1, %s1129_s19   ;;  %s1129_s19 = sphi %s1127_s19, %s721_s19   ;;  %s1125_s14 = sphi %s1300_s14, %s1345_s14   ;;  %s1121_s9 = sphi %s1344_s9, %s740_s9   ;;  %s1117_s27 = sphi %s1343_s27, %s741_s27  }
 0x27f   : >> { %728 = vst [vmem:[%s1117_s27] sm:$0xff] %v727_v49  ;;  %730 = vst [vmem:[%s1117_s27 + $0x8] sm:$0xff] %v729_v50  ;;  %v733_v52 = vld [vmem:[%s1121_s9 + $0x18] sm:$0xff]  ;;  %p736_p11 = scmp.ge.s32.totalorder %s735_s20, %s1291_s18  ;;  %p720_p12 = scmp.ge.s32.totalorder %s721_s19, %s1291_s18 }
 0x280   : >> { %732 = vst [vmem:[%s1117_s27 + $0x10] sm:$0xff] %v731_v51  ;;  %734 = vst [vmem:[%s1117_s27 + $0x18] sm:$0xff] %v733_v52 }
 0x281   : >> { %s1352_s20 = smov (%p736_p11, %s735_s20), 0  ;;  %723 = sbr.rel (!%p720_p12) target bundleno = 638 (0x27e), region = 138 }
 0x282   : >> { %s898_s21 = sshll.u32 %s1352_s20, 5  ;;  %s1345_s14 = smov %s1352_s20 }
 0x283   : >> { %s740_s9 = scalar_lea.vmem %s1272_s11, %s898_s21 [#allocation2]   ;;  %s741_s27 = scalar_lea.vmem %s1285_s16, %s898_s21  }
 0x286 PF: > { %s1316_s22 = sand.u32 3, %s1350_s24   ;;  %s909_s23 = sshll.u32 %s1291_s18, 5 }
 0x287   : > { %s746_s26 = scalar_lea.vmem %s1272_s11, %s909_s23 [#allocation2]   ;;  %s748_s29 = scalar_lea.vmem %s1285_s16, %s909_s23  }
 0x288   : > { %p903_p13 = scmp.le.s32.totalorder %s1316_s22, 0 }
 0x289   : > { %s1131_s30 = smov (!%p903_p13), %s748_s29   ;;  %s1135_s10 = smov (!%p903_p13), %s746_s26  }
 0x28a   : > { %839 = sbr.rel (%p903_p13) target bundleno = 663 (0x297), region = 143  ;;  %s1139_s12 = smov (!%p903_p13), 0  }
 0x28b   : > { %s1143_s13 = smov (!%p903_p13), 0  }
 0x28f LB: >> { %v758_v53 = vld [vmem:[%s1137_s10] sm:$0xff]  ;;  %s760_s24 = sadd.s32 1, %s1141_s12  ;;  %s752_s13 = sadd.s32 1, %s1145_s13   ;;  %s1145_s13 = sphi %s1143_s13, %s752_s13   ;;  %s1141_s12 = sphi %s1139_s12, %s1140_s12   ;;  %s1137_s10 = sphi %s1135_s10, %s765_s10   ;;  %s1133_s30 = sphi %s1131_s30, %s766_s30  }
 0x290   : >> { %759 = vst [vmem:[%s1133_s30] sm:$0xff] %v758_v53  ;;  %p761_p0 = scmp.ge.s32.totalorder %s760_s24, %s1316_s22  ;;  %p751_p1 = scmp.ge.s32.totalorder %s752_s13, %s1316_s22 }
 0x292   : >> { %s1354_s24 = smov (%p761_p0, %s760_s24), 0  ;;  %754 = sbr.rel (!%p751_p1) target bundleno = 655 (0x28f), region = 149 }
 0x293   : >> { %s904_s11 = sshll.u32 %s1354_s24, 3  ;;  %s1140_s12 = smov %s1354_s24  }
 0x294   : >> { %s765_s10 = scalar_lea.vmem %s746_s26, %s904_s11 [#allocation2]   ;;  %s766_s30 = scalar_lea.vmem %s748_s29, %s904_s11  }
 0x297 PF: > { %p14_p2 = scmp.ge.s32.totalorder %s1202_s28, 4   ;;  %s1346_s24 = smov %s1109_s25 }
 0x298   : > { %s1347_s25 = smov %s1210_s8  ;;  %s1348_s26 = smov %s1202_s28 }
 0x299   :  { %16 = sbr.rel (!%p14_p2) target bundleno = 2 (0x2), region = 160 }

</bundles_post_ra>
